<compile_context>
chip_gen: v6e
topology: v6e:2x2x1
jax: 0.10.0
libtpu: 0.0.40
codegen_flags: <defaults>
</compile_context>

<pallas_src>
import functools

import numpy as np
import jax
import jax.numpy as jnp
from jax.experimental import pallas as pl
from jax.experimental.pallas import tpu as pltpu
from scipy.optimize import linear_sum_assignment

MATCHER_ALPHA = 0.25      # HungarianMatcher hard-codes alpha=0.25, gamma=2
COST_CLASS = 2.0          # deformable-DETR matcher defaults
COST_BBOX = 5.0
COST_GIOU = 2.0
_EPS = 1e-7
_NEG_LOGIT = -1.0e4       # padded class lanes: sigmoid ~ 0 -> zero loss terms
_DUMMY_BOX = np.array([0.5, 0.5, 0.2, 0.2], np.float32)


def _round_up(x, m):
    return ((x + m - 1) // m) * m


def _row_tiling(nq):
    """Pick a query-row tile (multiple of 8, capped at 512 for v7x VMEM)."""
    for tile in (512, 256, 128):
        if nq >= tile:
            return tile, _round_up(nq, tile)
    tile = _round_up(max(nq, 8), 8)
    return tile, tile


def _matcher_vmem_limit(tile, c_pad, t_pad):
    """Explicit scoped-VMEM budget for the matcher kernel at large C / T."""
    need = (2 * tile * c_pad * 2        # bf16 logits block, double-buffered
            + 2 * c_pad * t_pad * 2     # bf16 one-hot (conservatively x2)
            + 2 * tile * 4 * 4          # f32 pred boxes block
            + 2 * 4 * t_pad * 4         # f32 target boxes (transposed)
            + 2 * tile * t_pad * 4)     # f32 cost output, double-buffered
    if need <= 24 * 1024 * 1024:
        return None                     # compiler defaults are fine
    return int(min(max(2 * need, 32 * 1024 * 1024), 64 * 1024 * 1024))


def _giou_from_cxcywh(ocx, ocy, ow, oh, tcx, tcy, tw, th):
    """Pairwise (broadcasting) GIoU from cxcywh coordinate slabs."""
    ox0, oy0 = ocx - 0.5 * ow, ocy - 0.5 * oh
    ox1, oy1 = ocx + 0.5 * ow, ocy + 0.5 * oh
    tx0, ty0 = tcx - 0.5 * tw, tcy - 0.5 * th
    tx1, ty1 = tcx + 0.5 * tw, tcy + 0.5 * th
    area_o = (ox1 - ox0) * (oy1 - oy0)
    area_t = (tx1 - tx0) * (ty1 - ty0)
    iw = jnp.maximum(jnp.minimum(ox1, tx1) - jnp.maximum(ox0, tx0), 0.0)
    ih = jnp.maximum(jnp.minimum(oy1, ty1) - jnp.maximum(oy0, ty0), 0.0)
    inter = iw * ih
    union = area_o + area_t - inter
    iou = inter * pl.reciprocal(union + _EPS, approx=True)
    cw = jnp.maximum(jnp.maximum(ox1, tx1) - jnp.minimum(ox0, tx0), 0.0)
    ch = jnp.maximum(jnp.maximum(oy1, ty1) - jnp.minimum(oy0, ty0), 0.0)
    area_c = cw * ch
    giou = iou - (area_c - union) * pl.reciprocal(area_c + _EPS, approx=True)
    return giou


# ----------------------------------------------------------------------------
# Kernel 1: batched Hungarian-matcher cost matrix, all layers in one launch.
#   cost[l, i, j] = 5*L1 + 2*focal-class + 2*(-GIoU)   for query i, target j.
# ----------------------------------------------------------------------------
@functools.lru_cache(maxsize=None)
def _build_matcher_cost_call(L, nq_pad, tile, c_pad, t_pad, vmem_limit):
    n_row_tiles = nq_pad // tile

    def kernel(logits_ref, onehot_t_ref, box_ref, tgt_box_t_ref, cost_ref):
        x = logits_ref[...].astype(jnp.float32)            # [tile, Cp]
        # one exp + one log1p shared between -log(p) and -log(1-p)
        e = jnp.exp(-jnp.abs(x))
        log1pe = jnp.log1p(e)
        inv = pl.reciprocal(1.0 + e, approx=True)
        prob = jnp.where(x >= 0, inv, e * inv)             # sigmoid(x)
        neg_log_p = jnp.maximum(-x, 0.0) + log1pe          # -log(sigmoid(x))
        neg_log_1mp = jnp.maximum(x, 0.0) + log1pe         # -log(1-sigmoid(x))
        omp = 1.0 - prob
        neg_cost = (1.0 - MATCHER_ALPHA) * (prob * prob) * neg_log_1mp
        pos_cost = MATCHER_ALPHA * (omp * omp) * neg_log_p
        # gather by target class id == matmul with one-hot; pure selection, so
        # bf16 operands (4-8x MXU throughput) + f32 accumulation are safe.
        cost_class = jnp.dot((pos_cost - neg_cost).astype(jnp.bfloat16),
                             onehot_t_ref[...],
                             preferred_element_type=jnp.float32)   # [tile, Tp]

        ob = box_ref[...]                                  # [tile, 4]
        tbt = tgt_box_t_ref[...]                           # [4, Tp]
        ocx, ocy, ow, oh = ob[:, 0:1], ob[:, 1:2], ob[:, 2:3], ob[:, 3:4]
        tcx, tcy, tw, th = tbt[0:1, :], tbt[1:2, :], tbt[2:3, :], tbt[3:4, :]

        cost_bbox = (jnp.abs(ocx - tcx) + jnp.abs(ocy - tcy)
                     + jnp.abs(ow - tw) + jnp.abs(oh - th))         # [tile, Tp]
        giou = _giou_from_cxcywh(ocx, ocy, ow, oh, tcx, tcy, tw, th)

        cost_ref[...] = (COST_BBOX * cost_bbox + COST_CLASS * cost_class
                         - COST_GIOU * giou)

    return pl.pallas_call(
        kernel,
        out_shape=jax.ShapeDtypeStruct((L, nq_pad, t_pad), jnp.float32),
        grid=(L, n_row_tiles),
        in_specs=[pl.BlockSpec((None, tile, c_pad), lambda l, r: (l, r, 0)),
                  pl.BlockSpec((c_pad, t_pad), lambda l, r: (0, 0)),
                  pl.BlockSpec((None, tile, 4), lambda l, r: (l, r, 0)),
                  pl.BlockSpec((4, t_pad), lambda l, r: (0, 0))],
        out_specs=pl.BlockSpec((None, tile, t_pad), lambda l, r: (l, r, 0)),
        compiler_params=pltpu.CompilerParams(
            dimension_semantics=("parallel", "parallel"),
            vmem_limit_bytes=vmem_limit),
    )


def matcher_cost_batched(logits_stack_bf16, onehot_t_bf16, boxes_stack_f32,
                         tgt_bbox_t_f32, tile):
    L, nq_pad, c_pad = logits_stack_bf16.shape
    t_pad = onehot_t_bf16.shape[1]
    vmem_limit = _matcher_vmem_limit(tile, c_pad, t_pad)
    call = _build_matcher_cost_call(L, nq_pad, tile, c_pad, t_pad, vmem_limit)
    return call(logits_stack_bf16, onehot_t_bf16, boxes_stack_f32,
                tgt_bbox_t_f32)


# ----------------------------------------------------------------------------
# Kernel 2: sigmoid-focal-loss partial sums (one-hot built in-kernel from the
# int32 class ids).  Each (layer, row-tile) grid point writes its own (8,128)
# lane-dense partial tile; the tiny cross-tile sum happens in XLA.  Both grid
# axes are "parallel" so the work splits evenly across v7x's 2 TensorCores.
# ----------------------------------------------------------------------------
@functools.lru_cache(maxsize=None)
def _build_focal_call(L, nq_pad, tile, c_pad, nq_valid, alpha):
    n_row_tiles = nq_pad // tile
    need_row_mask = (nq_valid != nq_pad)

    def kernel(logits_ref, cls_ref, part_ref):
        x = logits_ref[...].astype(jnp.float32)                   # [tile, Cp]
        cls = cls_ref[...]                                        # [tile, 1] i32
        col = jax.lax.broadcasted_iota(jnp.int32, (tile, c_pad), 1)
        t = (col == cls).astype(jnp.float32)                      # in-kernel one-hot
        e = jnp.exp(-jnp.abs(x))
        log1pe = jnp.log1p(e)
        ce = jnp.maximum(x, 0.0) - x * t + log1pe                 # BCE-with-logits
        inv = pl.reciprocal(1.0 + e, approx=True)
        p = jnp.where(x >= 0, inv, e * inv)                       # sigmoid(x)
        p_t = p * t + (1.0 - p) * (1.0 - t)
        one_m = 1.0 - p_t
        alpha_t = alpha * t + (1.0 - alpha) * (1.0 - t)
        loss = alpha_t * ce * one_m * one_m                       # gamma = 2

        if need_row_mask:
            r = pl.program_id(1)

            @pl.when(r < n_row_tiles - 1)
            def _():                                              # full tiles
                part_ref[...] = jnp.broadcast_to(
                    jnp.reshape(jnp.sum(loss), (1, 1)), part_ref.shape)

            @pl.when(r == n_row_tiles - 1)
            def _():                                              # last tile only
                row = (jax.lax.broadcasted_iota(jnp.int32, (tile, c_pad), 0)
                       + (n_row_tiles - 1) * tile)
                masked = loss * (row < nq_valid).astype(jnp.float32)
                part_ref[...] = jnp.broadcast_to(
                    jnp.reshape(jnp.sum(masked), (1, 1)), part_ref.shape)
        else:
            part_ref[...] = jnp.broadcast_to(
                jnp.reshape(jnp.sum(loss), (1, 1)), part_ref.shape)

    return pl.pallas_call(
        kernel,
        out_shape=jax.ShapeDtypeStruct((L, n_row_tiles * 8, 128), jnp.float32),
        grid=(L, n_row_tiles),
        in_specs=[pl.BlockSpec((None, tile, c_pad), lambda l, r: (l, r, 0)),
                  pl.BlockSpec((None, tile, 1), lambda l, r: (l, r, 0))],
        out_specs=pl.BlockSpec((None, 8, 128), lambda l, r: (l, r, 0)),
        compiler_params=pltpu.CompilerParams(
            dimension_semantics=("parallel", "parallel")),
    )


# ----------------------------------------------------------------------------
# Kernel 3: matched-pair L1 / GIoU sums per layer, lane-dense [4, Npad] boxes.
# Tiny kernel (grid over layers only) kept out of the focal hot loop.
# ----------------------------------------------------------------------------
@functools.lru_cache(maxsize=None)
def _build_box_loss_call(L, n_pad, n_valid):
    def kernel(sbox_ref, tbox_ref, l1_ref, giou_ref):
        s = sbox_ref[...]                                         # [4, Npad]
        g = tbox_ref[...]                                         # [4, Npad]
        m = (jax.lax.broadcasted_iota(jnp.int32, (1, n_pad), 1)
             < n_valid).astype(jnp.float32)                       # [1, Npad]
        l1_sum = jnp.sum(jnp.abs(s - g) * m)

        scx, scy, sw, sh = s[0:1, :], s[1:2, :], s[2:3, :], s[3:4, :]
        tcx, tcy, tw, th = g[0:1, :], g[1:2, :], g[2:3, :], g[3:4, :]
        giou = _giou_from_cxcywh(scx, scy, sw, sh, tcx, tcy, tw, th)
        giou_sum = jnp.sum((1.0 - giou) * m)

        l1_ref[...] = jnp.broadcast_to(jnp.reshape(l1_sum, (1, 1)),
                                       l1_ref.shape)
        giou_ref[...] = jnp.broadcast_to(jnp.reshape(giou_sum, (1, 1)),
                                         giou_ref.shape)

    out_sds = jax.ShapeDtypeStruct((L, 8, 128), jnp.float32)
    scalar_spec = pl.BlockSpec((None, 8, 128), lambda l: (l, 0, 0))
    return pl.pallas_call(
        kernel,
        out_shape=(out_sds, out_sds),
        grid=(L,),
        in_specs=[pl.BlockSpec((None, 4, n_pad), lambda l: (l, 0, 0)),
                  pl.BlockSpec((None, 4, n_pad), lambda l: (l, 0, 0))],
        out_specs=(scalar_spec, scalar_spec),
        compiler_params=pltpu.CompilerParams(
            dimension_semantics=("parallel",)),
    )


# ----------------------------------------------------------------------------
# SetCriterion (forward-pass semantics of the PyTorch module)
# ----------------------------------------------------------------------------
class SetCriterion:
    def __init__(self, num_classes, weight_dict, losses, focal_alpha=0.25):
        self.num_classes = num_classes
        self.weight_dict = weight_dict
        self.losses = losses
        self.focal_alpha = float(focal_alpha)

    # ---- batched matcher: one kernel launch + one host sync for scipy -------
    def _match_all_layers(self, logits_stack, boxes_stack, targets, sizes,
                          B, Q, t_pad, c_pad, tile, L):
        T = sum(sizes)
        nq = B * Q
        if T == 0:
            empty = (np.zeros((0,), np.int64), np.zeros((0,), np.int64))
            return [[empty for _ in range(B)] for _ in range(L)]

        tgt_ids = np.zeros((t_pad,), np.int32)
        tgt_bbox = np.tile(_DUMMY_BOX, (t_pad, 1))
        off = 0
        for td in targets:
            n = int(np.asarray(td['labels']).shape[0])
            if n:
                tgt_ids[off:off + n] = np.asarray(td['labels'])
                tgt_bbox[off:off + n] = np.asarray(td['boxes'], np.float32)
            off += n
        onehot_t = np.zeros((c_pad, t_pad), np.float32)
        onehot_t[tgt_ids[:T], np.arange(T)] = 1.0          # exact in bf16 (0/1)

        cost = matcher_cost_batched(
            logits_stack, jnp.asarray(onehot_t, dtype=jnp.bfloat16),
            boxes_stack, jnp.asarray(tgt_bbox.T), tile)
        # TODO(synk): Hungarian assignment has no Pallas equivalent; single
        # device->host transfer here (padding sliced off on device first),
        # then scipy for every (layer, batch).
        cost_np = np.asarray(cost[:, :nq, :T])
        indices_per_layer = []
        for l in range(L):
            cl = cost_np[l].reshape(B, Q, T)
            idx, off = [], 0
            for b, n in enumerate(sizes):
                if n:
                    row, col = linear_sum_assignment(cl[b, :, off:off + n])
                else:
                    row = np.zeros((0,), np.int64)
                    col = np.zeros((0,), np.int64)
                idx.append((row.astype(np.int64), col.astype(np.int64)))
                off += n
            indices_per_layer.append(idx)
        return indices_per_layer

    def _layer_loss_dict(self, l, suffix, log, pre):
        d = {}
        for loss in self.losses:
            if loss == 'labels':
                d['loss_ce' + suffix] = pre['loss_ce'][l]
                if log:
                    d['class_error' + suffix] = pre['class_error']
            elif loss == 'boxes':
                d['loss_bbox' + suffix] = pre['loss_bbox'][l]
                d['loss_giou' + suffix] = pre['loss_giou'][l]
            elif loss == 'cardinality':
                d['cardinality_error' + suffix] = pre['cardinality_error'][l]
            elif loss == 'masks':
                # TODO(synk): mask focal + dice (bilinear resize) not implemented.
                raise NotImplementedError('masks loss not supported here')
            else:
                raise AssertionError(f'do you really want to compute {loss} loss?')
        return d

    def forward(self, outputs, targets):
        outputs_without_aux = {k: v for k, v in outputs.items()
                               if k not in ('aux_outputs', 'enc_outputs')}
        # TODO(synk): 'enc_outputs' (binarized-label encoder matching) not implemented.
        aux_list = list(outputs.get('aux_outputs', []))
        layer_outputs = [outputs_without_aux] + aux_list
        L = len(layer_outputs)

        logits0 = jnp.asarray(outputs_without_aux['pred_logits'])
        B, Q, C = logits0.shape
        nq = B * Q
        tile, nq_pad = _row_tiling(nq)
        c_pad = _round_up(C, 128)

        # device-side stacking + padding of all decoder layers
        logits_stack = jnp.stack([jnp.reshape(jnp.asarray(o['pred_logits']),
                                              (nq, C)) for o in layer_outputs])
        boxes_stack = jnp.stack([jnp.reshape(jnp.asarray(o['pred_boxes']),
                                             (nq, 4)) for o in layer_outputs])
        logits_stack = logits_stack.astype(jnp.float32)
        if c_pad != C:
            # padded class lanes at a large negative logit: sigmoid ~ 0, so
            # they contribute ~0 to focal loss and 0 to the class-gather cost.
            logits_stack = jnp.pad(logits_stack,
                                   ((0, 0), (0, 0), (0, c_pad - C)),
                                   constant_values=_NEG_LOGIT)
        if nq_pad != nq:
            logits_stack = jnp.pad(logits_stack,
                                   ((0, 0), (0, nq_pad - nq), (0, 0)))
            boxes_stack = jnp.pad(boxes_stack,
                                  ((0, 0), (0, nq_pad - nq), (0, 0)),
                                  constant_values=0.25)
        # logits (the big streamed tensor) in bf16 in HBM; boxes stay f32.
        logits_stack = logits_stack.astype(jnp.bfloat16)
        boxes_stack = boxes_stack.astype(jnp.float32)

        sizes = [int(np.asarray(t['labels']).shape[0]) for t in targets]
        T = sum(sizes)
        t_pad = _round_up(max(T, 1), 128)

        indices_per_layer = self._match_all_layers(
            logits_stack, boxes_stack, targets, sizes, B, Q, t_pad, c_pad,
            tile, L)

        num_boxes = max(float(T), 1.0)

        # ---- per-layer matched targets (tiny host bookkeeping) --------------
        n_pad = _round_up(max(T, 1), 128)
        # sentinel class id == c_pad (>= any lane index) reproduces PyTorch's
        # "drop the no-object column": unmatched queries get an all-zero target.
        tgt_classes = np.full((L, nq_pad, 1), c_pad, np.int32)
        src_gather_idx = np.zeros((L, n_pad), np.int32)
        tgt_matched = np.tile(_DUMMY_BOX, (L, n_pad, 1)).astype(np.float32)
        for l, indices in enumerate(indices_per_layer):
            if T == 0:
                continue
            batch_idx = np.concatenate(
                [np.full(src.shape, i, np.int64) for i, (src, _) in enumerate(indices)])
            src_idx = np.concatenate([src for src, _ in indices])
            flat = (batch_idx * Q + src_idx).astype(np.int32)
            labels_o = np.concatenate(
                [np.asarray(t['labels'])[J] for t, (_, J) in zip(targets, indices)]
            ).astype(np.int32)
            boxes_o = np.concatenate(
                [np.asarray(t['boxes'], np.float32).reshape(-1, 4)[J]
                 for t, (_, J) in zip(targets, indices)], axis=0)
            tgt_classes[l, flat, 0] = labels_o
            src_gather_idx[l, :T] = flat
            tgt_matched[l, :T, :] = boxes_o

        src_boxes = jnp.take_along_axis(
            boxes_stack, jnp.asarray(src_gather_idx)[:, :, None], axis=1)
        src_boxes_t = jnp.transpose(src_boxes, (0, 2, 1))            # [L, 4, Npad]
        tgt_boxes_t = jnp.asarray(np.transpose(tgt_matched, (0, 2, 1)))

        # ---- focal-loss kernel (per-tile partials, summed in XLA) -----------
        focal_call = _build_focal_call(L, nq_pad, tile, c_pad, nq,
                                       self.focal_alpha)
        focal_out = focal_call(logits_stack, jnp.asarray(tgt_classes))
        n_row_tiles = nq_pad // tile
        focal_partials = focal_out.reshape(L, n_row_tiles, 8, 128)[:, :, 0, 0]
        # focal.mean(1).sum()/num_boxes * Q  ==  total_sum / num_boxes
        loss_ce_all = jnp.sum(focal_partials, axis=1) / num_boxes    # [L]

        # ---- matched-pair box-loss kernel ------------------------------------
        box_call = _build_box_loss_call(L, n_pad, T)
        l1_out, giou_out = box_call(src_boxes_t, tgt_boxes_t)
        loss_bbox_all = l1_out[:, 0, 0] / num_boxes
        loss_giou_all = giou_out[:, 0, 0] / num_boxes

        # ---- logging metrics (plain JAX, vectorized over layers) ------------
        tgt_lengths = jnp.asarray(sizes, jnp.float32)
        argmax_cls = jnp.argmax(logits_stack[:, :nq, :C], axis=-1)
        card_pred = jnp.sum(jnp.reshape(argmax_cls != C - 1, (L, B, Q))
                            .astype(jnp.float32), axis=2)            # [L, B]
        card_err_all = jnp.mean(jnp.abs(card_pred - tgt_lengths[None, :]), axis=1)

        if T > 0:
            main_idx = indices_per_layer[0]
            b_idx = np.concatenate(
                [np.full(src.shape, i, np.int64) for i, (src, _) in enumerate(main_idx)])
            s_idx = np.concatenate([src for src, _ in main_idx])
            tgt_o = np.concatenate(
                [np.asarray(t['labels'])[J] for t, (_, J) in zip(targets, main_idx)]
            ).astype(np.int32)
            sel = logits0[jnp.asarray(b_idx.astype(np.int32)),
                          jnp.asarray(s_idx.astype(np.int32))]
            pred = jnp.argmax(sel, axis=-1)
            acc = jnp.mean((pred == jnp.asarray(tgt_o)).astype(jnp.float32)) * 100.0
            class_error = 100.0 - acc
        else:
            class_error = jnp.float32(0.0)

        pre = {'loss_ce': loss_ce_all, 'loss_bbox': loss_bbox_all,
               'loss_giou': loss_giou_all, 'cardinality_error': card_err_all,
               'class_error': class_error}

        losses = {}
        losses.update(self._layer_loss_dict(0, '', True, pre))
        for i in range(len(aux_list)):
            aux_losses = {}
            for loss in self.losses:
                if loss == 'masks':
                    continue
                if loss == 'labels':
                    aux_losses['loss_ce'] = pre['loss_ce'][i + 1]     # log=False
                elif loss == 'boxes':
                    aux_losses['loss_bbox'] = pre['loss_bbox'][i + 1]
                    aux_losses['loss_giou'] = pre['loss_giou'][i + 1]
                elif loss == 'cardinality':
                    aux_losses['cardinality_error'] = pre['cardinality_error'][i + 1]
            losses.update({k + f'_{i}': v for k, v in aux_losses.items()})
        return losses


# ----------------------------------------------------------------------------
if __name__ == "__main__":
    key = jax.random.PRNGKey(0)
    B, Q, C = 2, 16, 8
    n_aux = 2
    keys = jax.random.split(key, 5 + 2 * n_aux)

    pred_logits = jax.random.normal(keys[0], (B, Q, C), jnp.float32)
    pred_boxes = jax.nn.sigmoid(jax.random.normal(keys[1], (B, Q, 4), jnp.float32))
    aux_outputs = []
    for i in range(n_aux):
        al = jax.random.normal(keys[5 + 2 * i], (B, Q, C), jnp.float32)
        ab = jax.nn.sigmoid(jax.random.normal(keys[6 + 2 * i], (B, Q, 4), jnp.float32))
        aux_outputs.append({'pred_logits': al, 'pred_boxes': ab})

    n_tgt = [3, 4]
    labels_all = np.asarray(jax.random.randint(keys[2], (sum(n_tgt),), 0, C))
    centers = jax.random.uniform(keys[3], (sum(n_tgt), 2), minval=0.3, maxval=0.7)
    wh = jax.random.uniform(keys[4], (sum(n_tgt), 2), minval=0.1, maxval=0.3)
    boxes_all = np.asarray(jnp.concatenate([centers, wh], axis=-1), np.float32)

    targets = []
    off = 0
    for n in n_tgt:
        targets.append({'labels': labels_all[off:off + n],
                        'boxes': boxes_all[off:off + n]})
        off += n

    weight_dict = {'loss_ce': 2.0, 'loss_bbox': 5.0, 'loss_giou': 2.0}
    criterion = SetCriterion(num_classes=C, weight_dict=weight_dict,
                             losses=['labels', 'boxes', 'cardinality'],
                             focal_alpha=0.25)

    outputs = {'pred_logits': pred_logits, 'pred_boxes': pred_boxes,
               'aux_outputs': aux_outputs}
    losses = criterion.forward(outputs, targets)

    for v in losses.values():
        if hasattr(v, 'block_until_ready'):
            jax.block_until_ready(v)
    print("KERNEL_OK")
</pallas_src>

<mosaic_0001>
module attributes {stable_mosaic.version = 11 : i64} {
  func.func @kernel(%arg0: i32, %arg1: i32, %arg2: memref<1x32x128xbf16, #tpu.memory_space<vmem>>, %arg3: memref<128x128xbf16, #tpu.memory_space<vmem>>, %arg4: memref<1x32x4xf32, #tpu.memory_space<vmem>>, %arg5: memref<4x128xf32, #tpu.memory_space<vmem>>, %arg6: memref<1x32x128xf32, #tpu.memory_space<vmem>>) attributes {dimension_semantics = [#tpu.dimension_semantics<parallel>, #tpu.dimension_semantics<parallel>], iteration_bounds = array<i64: 3, 1>, scalar_prefetch = 0 : i64, scratch_operands = 0 : i64, tpu.core_type = #tpu.core_type<tc>, window_params = [{transform_indices = @transform_0, window_bounds = array<i64: 1, 32, 128>}, {pipeline_mode = #tpu.pipeline_mode<synchronous>, transform_indices = @transform_1, window_bounds = array<i64: 128, 128>}, {transform_indices = @transform_2, window_bounds = array<i64: 1, 32, 4>}, {pipeline_mode = #tpu.pipeline_mode<synchronous>, transform_indices = @transform_3, window_bounds = array<i64: 4, 128>}, {transform_indices = @transform_4, window_bounds = array<i64: 1, 32, 128>}]} {
    %c0 = arith.constant 0 : index
    %c0_0 = arith.constant 0 : index
    %c0_1 = arith.constant 0 : index
    %0 = vector.load %arg2[%c0, %c0_0, %c0_1] : memref<1x32x128xbf16, #tpu.memory_space<vmem>>, vector<1x32x128xbf16>
    %1 = vector.shape_cast %0 : vector<1x32x128xbf16> to vector<32x128xbf16>
    %2 = arith.extf %1 : vector<32x128xbf16> to vector<32x128xf32>
    %3 = math.absf %2 : vector<32x128xf32>
    %cst = arith.constant 0.000000e+00 : f32
    %4 = vector.broadcast %cst : f32 to vector<32x128xf32>
    %5 = arith.subf %4, %3 : vector<32x128xf32>
    %6 = math.exp %5 : vector<32x128xf32>
    %7 = math.log1p %6 : vector<32x128xf32>
    %cst_2 = arith.constant 1.000000e+00 : f32
    %8 = vector.broadcast %cst_2 : f32 to vector<32x128xf32>
    %9 = arith.addf %8, %6 : vector<32x128xf32>
    %10 = tpu.reciprocal %9 {approx = true} : vector<32x128xf32> -> vector<32x128xf32>
    %cst_3 = arith.constant 0.000000e+00 : f32
    %11 = vector.broadcast %cst_3 : f32 to vector<32x128xf32>
    %12 = arith.cmpf oge, %2, %11 : vector<32x128xf32>
    %13 = arith.mulf %6, %10 : vector<32x128xf32>
    %14 = arith.select %12, %10, %13 : vector<32x128xi1>, vector<32x128xf32>
    %cst_4 = arith.constant 0.000000e+00 : f32
    %15 = vector.broadcast %cst_4 : f32 to vector<32x128xf32>
    %16 = arith.subf %15, %2 : vector<32x128xf32>
    %cst_5 = arith.constant 0.000000e+00 : f32
    %17 = vector.broadcast %cst_5 : f32 to vector<32x128xf32>
    %18 = arith.maximumf %16, %17 : vector<32x128xf32>
    %19 = arith.addf %18, %7 : vector<32x128xf32>
    %cst_6 = arith.constant 0.000000e+00 : f32
    %20 = vector.broadcast %cst_6 : f32 to vector<32x128xf32>
    %21 = arith.maximumf %2, %20 : vector<32x128xf32>
    %22 = arith.addf %21, %7 : vector<32x128xf32>
    %cst_7 = arith.constant 1.000000e+00 : f32
    %23 = vector.broadcast %cst_7 : f32 to vector<32x128xf32>
    %24 = arith.subf %23, %14 : vector<32x128xf32>
    %25 = arith.mulf %14, %14 : vector<32x128xf32>
    %cst_8 = arith.constant 7.500000e-01 : f32
    %26 = vector.broadcast %cst_8 : f32 to vector<32x128xf32>
    %27 = arith.mulf %26, %25 : vector<32x128xf32>
    %28 = arith.mulf %27, %22 : vector<32x128xf32>
    %29 = arith.mulf %24, %24 : vector<32x128xf32>
    %cst_9 = arith.constant 2.500000e-01 : f32
    %30 = vector.broadcast %cst_9 : f32 to vector<32x128xf32>
    %31 = arith.mulf %30, %29 : vector<32x128xf32>
    %32 = arith.mulf %31, %19 : vector<32x128xf32>
    %33 = arith.subf %32, %28 : vector<32x128xf32>
    %34 = arith.truncf %33 : vector<32x128xf32> to vector<32x128xbf16>
    %c0_10 = arith.constant 0 : index
    %c0_11 = arith.constant 0 : index
    %35 = vector.load %arg3[%c0_10, %c0_11] : memref<128x128xbf16, #tpu.memory_space<vmem>>, vector<128x128xbf16>
    %cst_12 = arith.constant dense<0.000000e+00> : vector<32x128xf32>
    %36 = tpu.matmul %34, %35, %cst_12 {dimension_numbers = #tpu.dot_dimension_numbers<[1], [0], [0], [1], [0, 0, 1, 1], [], []>} : vector<32x128xbf16>, vector<128x128xbf16>, vector<32x128xf32> -> vector<32x128xf32>
    %c0_13 = arith.constant 0 : index
    %c0_14 = arith.constant 0 : index
    %c0_15 = arith.constant 0 : index
    %37 = vector.load %arg4[%c0_13, %c0_14, %c0_15] : memref<1x32x4xf32, #tpu.memory_space<vmem>>, vector<1x32x4xf32>
    %38 = vector.shape_cast %37 : vector<1x32x4xf32> to vector<32x4xf32>
    %c0_16 = arith.constant 0 : index
    %c0_17 = arith.constant 0 : index
    %39 = vector.load %arg5[%c0_16, %c0_17] : memref<4x128xf32, #tpu.memory_space<vmem>>, vector<4x128xf32>
    %40 = vector.extract_strided_slice %38 {offsets = [0, 0], sizes = [32, 1], strides = [1, 1]} : vector<32x4xf32> to vector<32x1xf32>
    %41 = vector.extract_strided_slice %38 {offsets = [0, 1], sizes = [32, 1], strides = [1, 1]} : vector<32x4xf32> to vector<32x1xf32>
    %42 = vector.extract_strided_slice %38 {offsets = [0, 2], sizes = [32, 1], strides = [1, 1]} : vector<32x4xf32> to vector<32x1xf32>
    %43 = vector.extract_strided_slice %38 {offsets = [0, 3], sizes = [32, 1], strides = [1, 1]} : vector<32x4xf32> to vector<32x1xf32>
    %44 = vector.extract_strided_slice %39 {offsets = [0, 0], sizes = [1, 128], strides = [1, 1]} : vector<4x128xf32> to vector<1x128xf32>
    %45 = vector.extract_strided_slice %39 {offsets = [1, 0], sizes = [1, 128], strides = [1, 1]} : vector<4x128xf32> to vector<1x128xf32>
    %46 = vector.extract_strided_slice %39 {offsets = [2, 0], sizes = [1, 128], strides = [1, 1]} : vector<4x128xf32> to vector<1x128xf32>
    %47 = vector.extract_strided_slice %39 {offsets = [3, 0], sizes = [1, 128], strides = [1, 1]} : vector<4x128xf32> to vector<1x128xf32>
    %48 = vector.broadcast %40 : vector<32x1xf32> to vector<32x128xf32>
    %49 = vector.broadcast %44 : vector<1x128xf32> to vector<32x128xf32>
    %50 = arith.subf %48, %49 : vector<32x128xf32>
    %51 = math.absf %50 : vector<32x128xf32>
    %52 = vector.broadcast %41 : vector<32x1xf32> to vector<32x128xf32>
    %53 = vector.broadcast %45 : vector<1x128xf32> to vector<32x128xf32>
    %54 = arith.subf %52, %53 : vector<32x128xf32>
    %55 = math.absf %54 : vector<32x128xf32>
    %56 = arith.addf %51, %55 : vector<32x128xf32>
    %57 = vector.broadcast %42 : vector<32x1xf32> to vector<32x128xf32>
    %58 = vector.broadcast %46 : vector<1x128xf32> to vector<32x128xf32>
    %59 = arith.subf %57, %58 : vector<32x128xf32>
    %60 = math.absf %59 : vector<32x128xf32>
    %61 = arith.addf %56, %60 : vector<32x128xf32>
    %62 = vector.broadcast %43 : vector<32x1xf32> to vector<32x128xf32>
    %63 = vector.broadcast %47 : vector<1x128xf32> to vector<32x128xf32>
    %64 = arith.subf %62, %63 : vector<32x128xf32>
    %65 = math.absf %64 : vector<32x128xf32>
    %66 = arith.addf %61, %65 : vector<32x128xf32>
    %cst_18 = arith.constant 5.000000e-01 : f32
    %67 = vector.broadcast %cst_18 : f32 to vector<32x1xf32>
    %68 = arith.mulf %67, %42 : vector<32x1xf32>
    %69 = arith.subf %40, %68 : vector<32x1xf32>
    %cst_19 = arith.constant 5.000000e-01 : f32
    %70 = vector.broadcast %cst_19 : f32 to vector<32x1xf32>
    %71 = arith.mulf %70, %43 : vector<32x1xf32>
    %72 = arith.subf %41, %71 : vector<32x1xf32>
    %cst_20 = arith.constant 5.000000e-01 : f32
    %73 = vector.broadcast %cst_20 : f32 to vector<32x1xf32>
    %74 = arith.mulf %73, %42 : vector<32x1xf32>
    %75 = arith.addf %40, %74 : vector<32x1xf32>
    %cst_21 = arith.constant 5.000000e-01 : f32
    %76 = vector.broadcast %cst_21 : f32 to vector<32x1xf32>
    %77 = arith.mulf %76, %43 : vector<32x1xf32>
    %78 = arith.addf %41, %77 : vector<32x1xf32>
    %cst_22 = arith.constant 5.000000e-01 : f32
    %79 = vector.broadcast %cst_22 : f32 to vector<1x128xf32>
    %80 = arith.mulf %79, %46 : vector<1x128xf32>
    %81 = arith.subf %44, %80 : vector<1x128xf32>
    %cst_23 = arith.constant 5.000000e-01 : f32
    %82 = vector.broadcast %cst_23 : f32 to vector<1x128xf32>
    %83 = arith.mulf %82, %47 : vector<1x128xf32>
    %84 = arith.subf %45, %83 : vector<1x128xf32>
    %cst_24 = arith.constant 5.000000e-01 : f32
    %85 = vector.broadcast %cst_24 : f32 to vector<1x128xf32>
    %86 = arith.mulf %85, %46 : vector<1x128xf32>
    %87 = arith.addf %44, %86 : vector<1x128xf32>
    %cst_25 = arith.constant 5.000000e-01 : f32
    %88 = vector.broadcast %cst_25 : f32 to vector<1x128xf32>
    %89 = arith.mulf %88, %47 : vector<1x128xf32>
    %90 = arith.addf %45, %89 : vector<1x128xf32>
    %91 = arith.subf %75, %69 : vector<32x1xf32>
    %92 = arith.subf %78, %72 : vector<32x1xf32>
    %93 = arith.mulf %91, %92 : vector<32x1xf32>
    %94 = arith.subf %87, %81 : vector<1x128xf32>
    %95 = arith.subf %90, %84 : vector<1x128xf32>
    %96 = arith.mulf %94, %95 : vector<1x128xf32>
    %97 = vector.broadcast %75 : vector<32x1xf32> to vector<32x128xf32>
    %98 = vector.broadcast %87 : vector<1x128xf32> to vector<32x128xf32>
    %99 = arith.minimumf %97, %98 : vector<32x128xf32>
    %100 = vector.broadcast %69 : vector<32x1xf32> to vector<32x128xf32>
    %101 = vector.broadcast %81 : vector<1x128xf32> to vector<32x128xf32>
    %102 = arith.maximumf %100, %101 : vector<32x128xf32>
    %103 = arith.subf %99, %102 : vector<32x128xf32>
    %cst_26 = arith.constant 0.000000e+00 : f32
    %104 = vector.broadcast %cst_26 : f32 to vector<32x128xf32>
    %105 = arith.maximumf %103, %104 : vector<32x128xf32>
    %106 = vector.broadcast %78 : vector<32x1xf32> to vector<32x128xf32>
    %107 = vector.broadcast %90 : vector<1x128xf32> to vector<32x128xf32>
    %108 = arith.minimumf %106, %107 : vector<32x128xf32>
    %109 = vector.broadcast %72 : vector<32x1xf32> to vector<32x128xf32>
    %110 = vector.broadcast %84 : vector<1x128xf32> to vector<32x128xf32>
    %111 = arith.maximumf %109, %110 : vector<32x128xf32>
    %112 = arith.subf %108, %111 : vector<32x128xf32>
    %cst_27 = arith.constant 0.000000e+00 : f32
    %113 = vector.broadcast %cst_27 : f32 to vector<32x128xf32>
    %114 = arith.maximumf %112, %113 : vector<32x128xf32>
    %115 = arith.mulf %105, %114 : vector<32x128xf32>
    %116 = vector.broadcast %93 : vector<32x1xf32> to vector<32x128xf32>
    %117 = vector.broadcast %96 : vector<1x128xf32> to vector<32x128xf32>
    %118 = arith.addf %116, %117 : vector<32x128xf32>
    %119 = arith.subf %118, %115 : vector<32x128xf32>
    %cst_28 = arith.constant 1.000000e-07 : f32
    %120 = vector.broadcast %cst_28 : f32 to vector<32x128xf32>
    %121 = arith.addf %119, %120 : vector<32x128xf32>
    %122 = tpu.reciprocal %121 {approx = true} : vector<32x128xf32> -> vector<32x128xf32>
    %123 = arith.mulf %115, %122 : vector<32x128xf32>
    %124 = vector.broadcast %75 : vector<32x1xf32> to vector<32x128xf32>
    %125 = vector.broadcast %87 : vector<1x128xf32> to vector<32x128xf32>
    %126 = arith.maximumf %124, %125 : vector<32x128xf32>
    %127 = vector.broadcast %69 : vector<32x1xf32> to vector<32x128xf32>
    %128 = vector.broadcast %81 : vector<1x128xf32> to vector<32x128xf32>
    %129 = arith.minimumf %127, %128 : vector<32x128xf32>
    %130 = arith.subf %126, %129 : vector<32x128xf32>
    %cst_29 = arith.constant 0.000000e+00 : f32
    %131 = vector.broadcast %cst_29 : f32 to vector<32x128xf32>
    %132 = arith.maximumf %130, %131 : vector<32x128xf32>
    %133 = vector.broadcast %78 : vector<32x1xf32> to vector<32x128xf32>
    %134 = vector.broadcast %90 : vector<1x128xf32> to vector<32x128xf32>
    %135 = arith.maximumf %133, %134 : vector<32x128xf32>
    %136 = vector.broadcast %72 : vector<32x1xf32> to vector<32x128xf32>
    %137 = vector.broadcast %84 : vector<1x128xf32> to vector<32x128xf32>
    %138 = arith.minimumf %136, %137 : vector<32x128xf32>
    %139 = arith.subf %135, %138 : vector<32x128xf32>
    %cst_30 = arith.constant 0.000000e+00 : f32
    %140 = vector.broadcast %cst_30 : f32 to vector<32x128xf32>
    %141 = arith.maximumf %139, %140 : vector<32x128xf32>
    %142 = arith.mulf %132, %141 : vector<32x128xf32>
    %143 = arith.subf %142, %119 : vector<32x128xf32>
    %cst_31 = arith.constant 1.000000e-07 : f32
    %144 = vector.broadcast %cst_31 : f32 to vector<32x128xf32>
    %145 = arith.addf %142, %144 : vector<32x128xf32>
    %146 = tpu.reciprocal %145 {approx = true} : vector<32x128xf32> -> vector<32x128xf32>
    %147 = arith.mulf %143, %146 : vector<32x128xf32>
    %148 = arith.subf %123, %147 : vector<32x128xf32>
    %cst_32 = arith.constant 5.000000e+00 : f32
    %149 = vector.broadcast %cst_32 : f32 to vector<32x128xf32>
    %150 = arith.mulf %149, %66 : vector<32x128xf32>
    %cst_33 = arith.constant 2.000000e+00 : f32
    %151 = vector.broadcast %cst_33 : f32 to vector<32x128xf32>
    %152 = arith.mulf %151, %36 : vector<32x128xf32>
    %153 = arith.addf %150, %152 : vector<32x128xf32>
    %cst_34 = arith.constant 2.000000e+00 : f32
    %154 = vector.broadcast %cst_34 : f32 to vector<32x128xf32>
    %155 = arith.mulf %154, %148 : vector<32x128xf32>
    %156 = arith.subf %153, %155 : vector<32x128xf32>
    %c0_35 = arith.constant 0 : index
    %c0_36 = arith.constant 0 : index
    %c0_37 = arith.constant 0 : index
    %157 = vector.load %arg6[%c0_35, %c0_36, %c0_37] : memref<1x32x128xf32, #tpu.memory_space<vmem>>, vector<1x32x128xf32>
    %158 = vector.shape_cast %157 : vector<1x32x128xf32> to vector<32x128xf32>
    %159 = vector.shape_cast %156 : vector<32x128xf32> to vector<1x32x128xf32>
    tpu.vector_store %arg6[%c0_35, %c0_36, %c0_37], %159 {strides = array<i32>} : memref<1x32x128xf32, #tpu.memory_space<vmem>>, vector<1x32x128xf32>,
    return
  }
  func.func @transform_0(%arg0: i32, %arg1: i32) -> (i32, i32, i32) {
    %c0_i32 = arith.constant 0 : i32
    %c0_i32_0 = arith.constant 0 : i32
    return %arg0, %arg1, %c0_i32 : i32, i32, i32
  }
  func.func @transform_1(%arg0: i32, %arg1: i32) -> (i32, i32) {
    %c0_i32 = arith.constant 0 : i32
    %c0_i32_0 = arith.constant 0 : i32
    %c0_i32_1 = arith.constant 0 : i32
    return %c0_i32, %c0_i32_0 : i32, i32
  }
  func.func @transform_2(%arg0: i32, %arg1: i32) -> (i32, i32, i32) {
    %c0_i32 = arith.constant 0 : i32
    %c0_i32_0 = arith.constant 0 : i32
    return %arg0, %arg1, %c0_i32 : i32, i32, i32
  }
  func.func @transform_3(%arg0: i32, %arg1: i32) -> (i32, i32) {
    %c0_i32 = arith.constant 0 : i32
    %c0_i32_0 = arith.constant 0 : i32
    %c0_i32_1 = arith.constant 0 : i32
    return %c0_i32, %c0_i32_0 : i32, i32
  }
  func.func @transform_4(%arg0: i32, %arg1: i32) -> (i32, i32, i32) {
    %c0_i32 = arith.constant 0 : i32
    %c0_i32_0 = arith.constant 0 : i32
    return %arg0, %arg1, %c0_i32 : i32, i32, i32
  }
}

</mosaic_0001>

<bundles_post_ra>
// kernel: tpu_custom_call.1
= control target key start
LH: loop header
LB: loop body
LE: loop exit
PB: predicated region body
PF: predicated region fallthrough
CT: control target
= control target key end

     0   :  { %9 = vsyncpa [#allocation3], 0  ;;  %s1906_s0 = inlined_call_operand.hbm [shape: bf16[3,32,128], index: 0, kind: input, shape index: {}]   ;;  %s1907_s1 = inlined_call_operand.vmem [shape: bf16[128,128], index: 1, kind: input, shape index: {}]   ;;  %s1908_s2 = inlined_call_operand.vmem [shape: f32[3,32,4], index: 2, kind: input, shape index: {}]   ;;  %s1909_s3 = inlined_call_operand.vmem [shape: f32[4,128], index: 3, kind: input, shape index: {}]   ;;  %s1910_s4 = inlined_call_operand.hbm [shape: f32[3,32,128], index: 4, kind: output, shape index: {}]  }
   0x1   :  { %11 = vsyncpa [#allocation3 + $0x1], 0 }
   0x2   :  { %12 = vsyncpa [#allocation4], 0 }
   0x3   :  { %14 = vsyncpa [#allocation4 + $0x1], 0  ;;  %s1432_s15 = smov 0   ;;  %s1434_s16 = smov 0  }
   0x4   :  { %s1436_s17 = smov 0   ;;  %s1438_s18 = smov 0  }
   0x5   :  { %s1440_s19 = smov 0   ;;  %s1442_s20 = smov 0  }
   0x6 LB: > { %s1085_s21 = sadd.s32 4294967295, %s1393_s20   ;;  %s1086_s22 = sadd.s32 4294967294, %s1393_s20   ;;  %s1393_s20 = sphi %s1442_s20, %s20_s20   ;;  %s1389_s19 = sphi %s1440_s19, %s1920_s19   ;;  %s1385_s18 = sphi %s1438_s18, %s1919_s18   ;;  %s1381_s17 = sphi %s1436_s17, %s1918_s17   ;;  %s1377_s16 = sphi %s1434_s16, %s1917_s16   ;;  %s1373_s15 = sphi %s1432_s15, %s1916_s15  }
   0x7   : > { %s32_s23 = sadd.s32 1, %s1389_s19  ;;  %s41_s24 = sadd.s32 1, %s1381_s17 }
   0x8   : > { %p34_p0 = scmp.ge.s32.totalorder %s32_s23, 3  ;;  %p48_p1 = scmp.ne.s32.totalorder %s1381_s17, %s1377_s16 }
   0x9   : > { %p49_p2 = scmp.eq.s32.totalorder %s1393_s20, 0  ;;  %p54_p3 = scmp.ne.s32.totalorder %s1377_s16, %s1373_s15 }
   0xa   : > { %s1922_s23 = smov (%p34_p0, %s32_s23), 0  ;;  %p55_p5 = scmp.eq.s32.totalorder %s1085_s21, 0 }
   0xb   : > { %p1473_p4 = por %p49_p2, %p48_p1  ;;  %s36_s26 = ssub.s32 %s1389_s19, %s1922_s23 }
   0xc   : > { %p150_p6 = scmp.eq.s32.totalorder %s1085_s21, 2  ;;  %p39_p7 = scmp.eq.s32.totalorder %s36_s26, 0 }
   0xd   : > { %p1479_p8 = por %p55_p5, %p54_p3  ;;  %p156_p10 = scmp.eq.s32.totalorder %s1086_s22, 2 }
   0xe   : > { %p1483_p9 = por %p150_p6, %p48_p1  ;;  %p1164_p12 = scmp.lt.s32.totalorder %s1393_s20, 3 }
   0xf   : > { %s1488_s29 = scalar_select %p39_p7, %s1381_s17, %s41_s24  }
  0x10   : > { %p1490_p11 = por %p156_p10, %p54_p3  ;;  %s182_s5 = sand.u32 1, %s1381_s17  }
  0x11   : > { %s1089_s6 = sshll.u32 %s182_s5, 4  ;;  %s1110_s7 = sshll.u32 %s1389_s19, 8 }
  0x12   : > { %s194_s10 = scalar_lea.hbm %s1906_s0, %s1110_s7  ;;  %s186_s11 = scalar_lea.vmem [#allocation2], %s1089_s6 }
  0x13   : > { %s195_s12 = sshll.u32 %s186_s11, 4  ;;  %p1502_p13 = pnand %p1164_p12, %p1473_p4  ;;  %s196_s12 = int_to_ptr.vmem [resolvable:$true] %s195_s12 }
  0x14   : > { %p1092_p0 = scmp.ge.s32.totalorder %s1393_s20, 1  ;;  %s183_s14 = scalar_lea.sflag [#allocation3], %s182_s5 }
  0x15   : > { %p1287_p1 = pneg %p1502_p13  ;;  %s1298_s21 = scalar_lea.vmem %s196_s12, 256 }
  0x16   : > { %p1299_p2 = scmp.ne.s32.totalorder %s196_s12, %s1298_s21  ;;  %s1395_s22 = smov [#allocation2]  }
  0x17   : > { %s1303_s24 = sshll.u32 %s1395_s22, 4  ;;  %s1304_s24 = int_to_ptr.vmem [resolvable:$false] %s1303_s24 }
  0x18   : > { %p1301_p3 = pnand %p1299_p2, %p1287_p1  ;;  %s1305_s26 = scalar_lea.vmem %s1304_s24, 512 }
  0x19   : > { %p1306_p6 = scmp.lt.s32.totalorder %s196_s12, %s1304_s24  ;;  %p1307_p7 = scmp.lt.s32.totalorder %s1305_s26, %s1298_s21 }
  0x1a   : > { %p1302_p5 = pneg %p1301_p3 }
  0x1b   : > { %p1308_p10 = por %p1307_p7, %p1306_p6 }
  0x1d   : > { %p1309_p4 = pnand %p1308_p10, %p1302_p5 }
  0x1f   : > { %1312 = shalt.err (!%p1309_p4)
}
  0x20   : > { %s1396_s25 = smov 64   ;;  %s1397_s5 = smov 4  }
  0x21   : > { %1159 = dma.hbm_to_vmem [thread:$0]  (!%p1502_p13), %s194_s10, 256, %s196_s12, %s183_s14, %s1396_s25, %s1396_s25, %s1397_s5  }
  0x22   : > { %p216_p12 = scmp.lt.s32.totalorder %s1393_s20, 4 }
  0x24   : > { %p217_p1 = pnand %p1092_p0, %p216_p12 }
  0x25   : > { %s1515_s6 = sand.u32 (!%p217_p1), 1, %s1377_s16  }
  0x26   : > { %220 = sbr.rel (%p217_p1) target bundleno = 464 (0x1d0), region = 36  ;;  %s1093_s7 = sshll.u32 (!%p217_p1), %s1515_s6, 4 }
  0x27   : > { %s223_s8 = scalar_lea.sflag (!%p217_p1), [#allocation3], %s1515_s6  ;;  %s226_s9 = scalar_lea.vmem (!%p217_p1), [#allocation2], %s1093_s7 }
  0x2b   : > { %1364 = dma.done.wait (%p1479_p8), %s223_s8, 256  }
  0x2c   : > { %1366 = vsyncadd (%p1479_p8), %s223_s8, 4294967040  ;;  %p262_p13 = scmp.lt.s32.totalorder %s1385_s18, 2  ;;  %v1398_v0 = vmov 0   ;;  %v1399_v1 = vmov 2   ;;  %s1400_s27 = smov 126   ;;  %v1114_v10 = vld [vmem:[%s226_s9] sm:$0xff]  }
  0x2d   : > { %1224 = vset.pattern.permute.xlu1 %v1398_v0  ;;  %1226 = vset.pattern.permute.xlu0 %v1399_v1  ;;  %v1121_v11 = vld [vmem:[%s226_s9 + $0x8] sm:$0xff]   ;;  %v1542_v12 = vunpack.c.l.bf16 %v1114_v10  ;;  %v1544_v13 = vunpack.c.h.bf16 %v1114_v10  ;;  %v1401_v28 = vmov 1   ;;  %v1238_v30 = vld [vmem:[%s1907_s1 + $0x30] sm:$0xff]   ;;  %v1240_v39 = vld [vmem:[%s1907_s1 + $0x20] sm:$0xff]   ;;  %s1402_s22 = smov 127   ;;  %s1094_s25 = sshll.u32 %s1515_s6, 5 }
  0x2e   : > { %s263_s10 = scalar_select %p262_p13, %s1385_s18, 2  ;;  %v1546_v14 = vunpack.c.l.bf16 %v1121_v11  ;;  %v1548_v15 = vunpack.c.h.bf16 %v1121_v11  ;;  %v1237_v29 = vld [vmem:[%s1907_s1 + $0x38] sm:$0xff]   ;;  %v1239_v35 = vld [vmem:[%s1907_s1 + $0x28] sm:$0xff]   ;;  %v1242_v45 = vld [vmem:[%s1907_s1 + $0x10] sm:$0xff]  }
  0x2f   : > { %v281_v16 = vand.u32 2147483647, %v1542_v12  ;;  %v282_v17 = vand.u32 2147483647, %v1544_v13  ;;  %1132 = vmatprep.subr.bf16.mxu0 %v1237_v29  ;;  %v1241_v41 = vld [vmem:[%s1907_s1 + $0x18] sm:$0xff]   ;;  %vm341_vm0 = vcmp.ge.f32.partialorder %v1542_v12, 0.0 }
  0x30   : > { %s1111_s11 = sshll.u32 %s263_s10, 5  ;;  %v283_v18 = vand.u32 2147483647, %v1546_v14  ;;  %v284_v19 = vand.u32 2147483647, %v1548_v15  ;;  %1133 = vmatpush3.bf16.msra.mxu0 %v1237_v29  ;;  %vm342_vm1 = vcmp.ge.f32.partialorder %v1544_v13, 0.0 }
  0x31   : > { %s269_s14 = scalar_lea.vmem %s1908_s2, %s1111_s11  ;;  %v285_v20 = vsub.f32 0.0, %v281_v16  ;;  %v286_v21 = vsub.f32 0.0, %v282_v17  ;;  %1134 = vmatprep.subr.bf16.mxu0 %v1238_v30  ;;  %v353_v52 = vsub.f32 0.0, %v1542_v12  ;;  %v354_v53 = vsub.f32 0.0, %v1544_v13  ;;  %v1243_v62 = vld [vmem:[%s1907_s1 + $0x8] sm:$0xff]   ;;  %v1244_v29 = vld [vmem:[%s1907_s1] sm:$0xff]  }
  0x32   : > { %v1530_v2 = vld [vmem:[%s269_s14] sm:$0xff]  ;;  %v1532_v3 = vld [vmem:[%s269_s14 + $0x10] sm:$0xff]  ;;  %v1534_v4 = vld [vmem:[%s269_s14 + $0x8] sm:$0xff]  ;;  %v287_v22 = vsub.f32 0.0, %v283_v18  ;;  %v288_v23 = vsub.f32 0.0, %v284_v19  ;;  %vm343_vm2 = vcmp.ge.f32.partialorder %v1546_v14, 0.0 }
  0x33   : > { %v653_v5 = vmul.f32 0.5, %v1530_v2  ;;  %v655_v6 = vmul.f32 0.5, %v1532_v3  ;;  %v1538_v7 = vld [vmem:[%s269_s14 + $0x18] sm:$0xff]  ;;  %v654_v8 = vmul.f32 0.5, %v1534_v4  ;;  %v289_v24 = vmul.f32 1.442695, %v285_v20 }
  0x34   : > { %v656_v9 = vmul.f32 0.5, %v1538_v7  ;;  %v291_v25 = vmul.f32 1.442695, %v286_v21  ;;  %v293_v26 = vmul.f32 1.442695, %v287_v22  ;;  %1135 = vmatpush3.bf16.msra.mxu0 %v1238_v30  ;;  %vm344_vm5 = vcmp.ge.f32.partialorder %v1548_v15, 0.0 }
  0x35   : > { %661 = vrot.lane.b32.xlu0 %v653_v5, %s1400_s27  ;;  %665 = vrot.lane.b32.xlu1 %v655_v6, %s1400_s27  ;;  %v295_v27 = vmul.f32 1.442695, %v288_v23  ;;  %1245 = vpow2.f32 %v289_v24  ;;  %v357_v6 = vmax.f32 %v353_v52, 0.0  ;;  %v365_v16 = vmax.f32 %v1542_v12, 0.0  ;;  %s259_s5 = scalar_lea.vmem [#allocation5], %s1094_s25  ;;  %s1112_s8 = sshll.u32 %s1385_s18, 9 }
  0x36   : > { %1247 = vpow2.f32 %v291_v25  ;;  %1136 = vmatprep.subr.bf16.mxu0 %v1239_v35  ;;  %v366_v17 = vmax.f32 %v1544_v13, 0.0  ;;  %s980_s7 = sshll.u32 %s259_s5, 4  ;;  %s1859_s11 = scalar_lea.hbm %s1910_s4, %s1112_s8  ;;  %s1854_s7 = int_to_ptr.vmem [resolvable:$true] %s980_s7 }
  0x37   : > { %1249 = vpow2.f32 %v293_v26  ;;  %s965_s18 = scalar_lea.sflag [#allocation4], %s1515_s6  ;;  %s1313_s12 = scalar_lea.vmem %s1854_s7, 512 }
  0x38   : > { %1251 = vpow2.f32 %v295_v27  ;;  %1137 = vmatpush3.bf16.msra.mxu0 %v1239_v35  ;;  %p1314_p8 = scmp.ne.s32.totalorder %s1854_s7, %s1313_s12  ;;  %s1404_s13 = smov [#allocation5]  }
  0x39   : > { %663 = vrot.lane.b32.xlu0 %v654_v8, %s1400_s27  ;;  %667 = vrot.lane.b32.xlu1 %v656_v9, %s1400_s27  ;;  %v358_v8 = vmax.f32 %v354_v53, 0.0  ;;  %s1317_s14 = sshll.u32 %s1404_s13, 4  ;;  %s1318_s14 = int_to_ptr.vmem [resolvable:$false] %s1317_s14 }
  0x3a   : > { %1138 = vmatprep.subr.bf16.mxu0 %v1240_v39  ;;  %p1315_p0 = pnand %p1314_p8, %p1483_p9  ;;  %s1319_s27 = scalar_lea.vmem %s1318_s14, 1024 }
  0x3b   : > { %p1320_p3 = scmp.lt.s32.totalorder %s1854_s7, %s1318_s14  ;;  %p1321_p5 = scmp.lt.s32.totalorder %s1319_s27, %s1313_s12 }
  0x3c   : > { %1139 = vmatpush3.bf16.msra.mxu0 %v1240_v39  ;;  %p1316_p2 = pneg %p1315_p0 }
  0x3d   : > { %532 = vperm.xlu1 %1224, %v1534_v4   ;;  %1140 = vmatprep.subr.bf16.mxu0 %v1241_v41  ;;  %p1322_p6 = por %p1321_p5, %p1320_p3 }
  0x3f   : > { %p1323_p7 = pnand %p1322_p6, %p1316_p2 }
  0x40   : > { %1141 = vmatpush3.bf16.msra.mxu0 %v1241_v41 }
  0x41   : > { %537 = vperm.xlu1 %1224, %v1532_v3   ;;  %1142 = vmatprep.subr.bf16.mxu0 %v1242_v45 }
  0x42   : > { %v1246_v31 = vpop.eup %1245 }
  0x43   : > { %v1248_v32 = vpop.eup %1247  ;;  %v297_v33 = vadd.f32 1.0, %v1246_v31  ;;  %v300_v42 = vmul.f32 -0.5, %v1246_v31  ;;  %v303_v50 = vand.u32 2147483647, %v1246_v31 }
  0x44   : > { %v1564_v34 = vpop.eup %1249  ;;  %v306_v36 = vadd.f32 1.0, %v1248_v32  ;;  %v309_v43 = vmul.f32 -0.5, %v1248_v32  ;;  %v312_v51 = vand.u32 2147483647, %v1248_v32  ;;  %1143 = vmatpush3.bf16.msra.mxu0 %v1242_v45 }
  0x45   : > { %1225 = vset.pattern.permute.xlu1 %v1401_v28  ;;  %v1569_v37 = vpop.eup %1251  ;;  %1253 = vlog2.f32 %v297_v33  ;;  %v315_v38 = vadd.f32 1.0, %v1564_v34  ;;  %v318_v44 = vmul.f32 -0.5, %v1564_v34  ;;  %v301_v46 = vadd.f32 1.0, %v300_v42  ;;  %1144 = vmatprep.subr.bf16.mxu0 %v1243_v62 }
  0x46   : > { %558 = vperm.xlu1 %1225, %v1530_v2   ;;  %1255 = vlog2.f32 %v306_v36  ;;  %v324_v40 = vadd.f32 1.0, %v1569_v37  ;;  %v310_v47 = vadd.f32 1.0, %v309_v43  ;;  %v327_v48 = vmul.f32 -0.5, %v1569_v37 }
  0x47   : > { %1257 = vrcp.f32 %v297_v33  ;;  %v302_v56 = vmul.f32 %v1246_v31, %v301_v46  ;;  %v319_v58 = vadd.f32 1.0, %v318_v44  ;;  %vm304_vm3 = vcmp.lt.f32.partialorder %v303_v50, 0.0004427343 }
  0x48   : > { %1259 = vrcp.f32 %v306_v36  ;;  %v311_v57 = vmul.f32 %v1248_v32, %v310_v47  ;;  %vm313_vm4 = vcmp.lt.f32.partialorder %v312_v51, 0.0004427343  ;;  %1145 = vmatpush3.bf16.msra.mxu0 %v1243_v62  ;;  %v321_v35 = vand.u32 2147483647, %v1564_v34 }
  0x49   : > { %1261 = vlog2.f32 %v315_v38  ;;  %v320_v12 = vmul.f32 %v1564_v34, %v319_v58  ;;  %1146 = vmatprep.subr.bf16.mxu0 %v1244_v29  ;;  %v330_v42 = vand.u32 2147483647, %v1569_v37  ;;  %v367_v58 = vmax.f32 %v1546_v14, 0.0 }
  0x4a   : > { %1263 = vlog2.f32 %v324_v40  ;;  %vm322_vm6 = vcmp.lt.f32.partialorder %v321_v35, 0.0004427343 }
  0x4b   : > { %1265 = vrcp.f32 %v315_v38  ;;  %v328_v38 = vadd.f32 1.0, %v327_v48  ;;  %vm331_vm7 = vcmp.lt.f32.partialorder %v330_v42, 0.0004427343 }
  0x4c   : > { %1267 = vrcp.f32 %v324_v40  ;;  %1147 = vmatpush3.bf16.msra.mxu0 %v1244_v29 }
  0x4d   : > { %v329_v44 = vmul.f32 %v1569_v37, %v328_v38 }
  0x52   : > { %v1254_v49 = vpop.eup %1253 }
  0x53   : > { %v1256_v54 = vpop.eup %1255  ;;  %v299_v55 = vmul.f32 0.6931472, %v1254_v49 }
  0x54   : > { %v1258_v59 = vpop.eup %1257  ;;  %v308_v60 = vmul.f32 0.6931472, %v1256_v54 }
  0x55   : > { %v1260_v61 = vpop.eup %1259  ;;  %v305_v63 = vsel %vm304_vm3, %v302_v56, %v299_v55  ;;  %v345_v5 = vmul.f32 %v1258_v59, %v1246_v31  ;;  %v355_v55 = vsub.f32 0.0, %v1546_v14  ;;  %v356_v56 = vsub.f32 0.0, %v1548_v15 }
  0x56   : > { %v1262_v9 = vpop.eup %1261  ;;  %v314_v10 = vsel %vm313_vm4, %v311_v57, %v308_v60  ;;  %v346_v11 = vmul.f32 %v1260_v61, %v1248_v32  ;;  %v361_v20 = vadd.f32 %v357_v6, %v305_v63  ;;  %v369_v24 = vadd.f32 %v365_v16, %v305_v63 }
  0x57   : > { %v1264_v18 = vpop.eup %1263  ;;  %v349_v19 = vsel %vm341_vm0, %v1258_v59, %v345_v5  ;;  %v362_v21 = vadd.f32 %v358_v8, %v314_v10  ;;  %v317_v22 = vmul.f32 0.6931472, %v1262_v9  ;;  %v370_v25 = vadd.f32 %v366_v17, %v314_v10 }
  0x58   : > { %v350_v23 = vsel %vm342_vm1, %v1260_v61, %v346_v11  ;;  %v373_v26 = vsub.f32 1.0, %v349_v19  ;;  %v1266_v27 = vpop.eup %1265  ;;  %v377_v31 = vmul.f32 %v349_v19, %v349_v19  ;;  %v326_v36 = vmul.f32 0.6931472, %v1264_v18 }
  0x59   : > { %v374_v30 = vsub.f32 1.0, %v350_v23  ;;  %v378_v32 = vmul.f32 %v350_v23, %v350_v23  ;;  %v1268_v13 = vpop.eup %1267  ;;  %v347_v45 = vmul.f32 %v1266_v27, %v1564_v34  ;;  %v323_v50 = vsel %vm322_vm6, %v320_v12, %v317_v22 }
  0x5a   : > { %v389_v33 = vmul.f32 %v373_v26, %v373_v26  ;;  %v381_v39 = vmul.f32 0.75, %v377_v31  ;;  %v348_v48 = vmul.f32 %v1268_v13, %v1569_v37  ;;  %v332_v54 = vsel %vm331_vm7, %v329_v44, %v326_v36 }
  0x5b   : > { %v382_v40 = vmul.f32 0.75, %v378_v32  ;;  %v390_v41 = vmul.f32 %v374_v30, %v374_v30  ;;  %v351_v52 = vsel %vm343_vm2, %v1266_v27, %v347_v45  ;;  %v368_v59 = vmax.f32 %v1548_v15, 0.0 }
  0x5c   : > { %v393_v43 = vmul.f32 0.25, %v389_v33  ;;  %v385_v46 = vmul.f32 %v381_v39, %v369_v24  ;;  %v352_v34 = vsel %vm344_vm5, %v1268_v13, %v348_v48  ;;  %v359_v61 = vmax.f32 %v355_v55, 0.0 }
  0x5d   : > { %v386_v47 = vmul.f32 %v382_v40, %v370_v25  ;;  %v394_v49 = vmul.f32 0.25, %v390_v41  ;;  %v360_v37 = vmax.f32 %v356_v56, 0.0  ;;  %v375_v62 = vsub.f32 1.0, %v351_v52 }
  0x5e   : > { %v397_v51 = vmul.f32 %v393_v43, %v361_v20  ;;  %v371_v63 = vadd.f32 %v367_v58, %v323_v50  ;;  %v376_v5 = vsub.f32 1.0, %v352_v34  ;;  %v379_v6 = vmul.f32 %v351_v52, %v351_v52 }
  0x5f   : > { %v398_v53 = vmul.f32 %v394_v49, %v362_v21  ;;  %v363_v9 = vadd.f32 %v359_v61, %v323_v50  ;;  %v372_v10 = vadd.f32 %v368_v59, %v332_v54  ;;  %v380_v11 = vmul.f32 %v352_v34, %v352_v34  ;;  %v1648_v34 = vld [vmem:[%s1909_s3] sm:$0xf] }
  0x60   : > { %v401_v57 = vsub.f32 %v397_v51, %v385_v46  ;;  %v364_v16 = vadd.f32 %v360_v37, %v332_v54  ;;  %v383_v17 = vmul.f32 0.75, %v379_v6  ;;  %v391_v18 = vmul.f32 %v375_v62, %v375_v62 }
  0x61   : > { %v402_v60 = vsub.f32 %v398_v53, %v386_v47  ;;  %v392_v19 = vmul.f32 %v376_v5, %v376_v5  ;;  %v384_v20 = vmul.f32 0.75, %v380_v11  ;;  %v545_v51 = vlaneseq }
  0x62   : > { %v387_v14 = vmul.f32 %v383_v17, %v371_v63  ;;  %v395_v21 = vmul.f32 0.25, %v391_v18  ;;  %v1403_v58 = vmov 3  }
  0x63   : > { %v405_v8 = vpack.c.bf16 %v402_v60, %v401_v57  ;;  %v396_v15 = vmul.f32 0.25, %v392_v19  ;;  %v388_v22 = vmul.f32 %v384_v20, %v372_v10  ;;  %v1642_v53 = vshrl.u32 %v545_v51, 7 }
  0x64   : > { %v399_v23 = vmul.f32 %v395_v21, %v363_v9  ;;  %v681_v20 = vmul.f32 0.5, %v1648_v34 }
  0x65   : > { %1148 = vmatprep.mubr.bf16.mxu0 %v405_v8  ;;  %v400_v24 = vmul.f32 %v396_v15, %v364_v16  ;;  %v547_v57 = vsub.s32 0, %v1642_v53  ;;  %v575_v60 = vsub.s32 1, %v1642_v53 }
  0x66   : > { %v403_v25 = vsub.f32 %v399_v23, %v387_v14  ;;  %v683_v15 = vrot.slane %v681_v20, 2 }
  0x67   : > { %v404_v26 = vsub.f32 %v400_v24, %v388_v22  ;;  %v1652_v59 = vrot.slane %v1648_v34, %v547_v57  ;;  %v1659_v37 = vrot.slane %v1648_v34, %v575_v60 }
  0x68   : > { %v686_v23 = vadd.f32 %v683_v15, %v1648_v34  ;;  %v685_v24 = vsub.f32 %v1648_v34, %v683_v15 }
  0x69   : > { %v406_v27 = vpack.c.bf16 %v404_v26, %v403_v25 }
  0x6a   : > { %v711_v26 = vsub.f32 %v686_v23, %v685_v24 }
  0x6b   : > { %1149 = vmatmul.mubr.bf16.vlgmr.msra.gmra.mxu0 %v406_v27 }
  0xa7   : > { %v662_v29 = vpop.permute.xlu0 %661  ;;  %v666_v30 = vpop.permute.xlu1 %665 }
  0xa8   : > { %v673_v31 = vsub.f32 %v1530_v2, %v662_v29  ;;  %v677_v32 = vadd.f32 %v662_v29, %v1530_v2  ;;  %v675_v12 = vsub.f32 %v1532_v3, %v666_v30  ;;  %v679_v33 = vadd.f32 %v666_v30, %v1532_v3 }
  0xa9   : > { %v713_v29 = vrot.slane %v711_v26, 1  ;;  %v1699_v30 = vrot.slane %v685_v24, %v547_v57 }
  0xaa   : > { %v687_v35 = vsub.f32 %v677_v32, %v673_v31  ;;  %v689_v13 = vsub.f32 %v679_v33, %v675_v12 }
  0xab   : > { %v664_v36 = vpop.permute.xlu0 %663  ;;  %v668_v38 = vpop.permute.xlu1 %667 }
  0xac   : > { %v674_v39 = vsub.f32 %v1534_v4, %v664_v36  ;;  %v678_v40 = vadd.f32 %v664_v36, %v1534_v4  ;;  %695 = vrot.lane.b32.xlu0 %v687_v35, %s1402_s22  ;;  %v676_v41 = vsub.f32 %v1538_v7, %v668_v38  ;;  %v680_v42 = vadd.f32 %v668_v38, %v1538_v7 }
  0xad   : > { %v715_v36 = vmul.f32 %v713_v29, %v711_v26 }
  0xae   : > { %v688_v43 = vsub.f32 %v678_v40, %v674_v39  ;;  %v690_v44 = vsub.f32 %v680_v42, %v676_v41 }
  0xb0   : > { %699 = vrot.lane.b32.xlu0 %v689_v13, %s1402_s22  ;;  %697 = vrot.lane.b32.xlu1 %v688_v43, %s1402_s22 }
  0xb4   : > { %590 = vperm.xlu0 %1226, %v1530_v2   ;;  %701 = vrot.lane.b32.xlu1 %v690_v44, %s1402_s22 }
  0xb8   : > { %1227 = vset.pattern.permute.xlu0 %v1401_v28  ;;  %566 = vperm.xlu1 %1225, %v1532_v3   ;;  %v1638_v45 = vpop.permute.xlu1 %532 }
  0xb9   : > { %562 = vperm.xlu0 %1227, %v1534_v4  }
  0xbc   : > { %570 = vperm.xlu1 %1225, %v1538_v7   ;;  %v538_v46 = vpop.permute.xlu1 %537 }
  0xbd   : > { %785 = vperm.xlu0 %1227, %v678_v40   ;;  %v551_v61 = vsub.f32 %v538_v46, %v1652_v59 }
  0xbf   : > { %v555_v63 = vand.u32 2147483647, %v551_v61 }
  0xc0   : > { %1228 = vset.pattern.permute.xlu1 %v1399_v1 }
  0xc1   : > { %805 = vperm.xlu0 %1227, %v673_v31   ;;  %594 = vperm.xlu1 %1228, %v1534_v4   ;;  %v1640_v47 = vpop.permute.xlu1 %558 }
  0xc5   : > { %813 = vperm.xlu0 %1227, %v675_v12   ;;  %598 = vperm.xlu1 %1228, %v1532_v3  }
  0xc9   : > { %1231 = vset.pattern.permute.xlu0 %v1398_v0  ;;  %1229 = vset.pattern.permute.xlu1 %v1398_v0 }
  0xca   : > { %527 = vperm.xlu0 %1231, %v1530_v2   ;;  %723 = vperm.xlu1 %1229, %v678_v40  }
  0xce   : > { %542 = vperm.xlu0 %1231, %v1538_v7   ;;  %728 = vperm.xlu1 %1229, %v679_v33  }
  0xd2   : > { %718 = vperm.xlu0 %1231, %v677_v32   ;;  %746 = vperm.xlu1 %1229, %v673_v31  }
  0xd6   : > { %733 = vperm.xlu0 %1231, %v680_v42   ;;  %756 = vperm.xlu1 %1229, %v675_v12   ;;  %v607_v12 = vsub.s32 2, %v1642_v53 }
  0xd8   : > { %v1718_v46 = vrot.slane %v1648_v34, %v607_v12 }
  0xda   : > { %751 = vperm.xlu0 %1231, %v674_v39   ;;  %1230 = vset.pattern.permute.xlu1 %v1401_v28 }
  0xdb   : > { %781 = vperm.xlu1 %1230, %v677_v32   ;;  %v1703_v32 = vrot.slane %v686_v23, %v547_v57 }
  0xde   : > { %761 = vperm.xlu0 %1231, %v676_v41  }
  0xdf   : > { %789 = vperm.xlu1 %1230, %v679_v33   ;;  %v1706_v33 = vrot.slane %v686_v23, %v575_v60 }
  0xe3   : > { %793 = vperm.xlu1 %1230, %v680_v42  }
  0xe7   : > { %809 = vperm.xlu1 %1230, %v674_v39  }
  0xeb   : > { %817 = vperm.xlu1 %1230, %v676_v41  }
  0xef   : > { %1232 = vset.pattern.permute.xlu1 %v1398_v0 }
 0x11e   : > { %v696_v49 = vpop.permute.xlu0 %695 }
 0x11f   : > { %v707_v50 = vmul.f32 %v696_v49, %v687_v35  ;;  %v1708_v35 = vrot.slane %v685_v24, %v575_v60 }
 0x121   : > { %842 = vperm.xlu0 %1231, %v707_v50   ;;  %v1721_v50 = vrot.slane %v715_v36, %v547_v57 }
 0x122   : > { %v698_v48 = vpop.permute.xlu1 %697  ;;  %v700_v28 = vpop.permute.xlu0 %699 }
 0x123   : > { %v708_v52 = vmul.f32 %v698_v48, %v688_v43  ;;  %v709_v55 = vmul.f32 %v700_v28, %v689_v13 }
 0x125   : > { %847 = vperm.xlu1 %1232, %v708_v52  }
 0x126   : > { %v702_v54 = vpop.permute.xlu1 %701 }
 0x127   : > { %v710_v56 = vmul.f32 %v702_v54, %v690_v44  ;;  %v577_v44 = vsub.f32 %v1640_v47, %v1659_v37  ;;  %v550_v47 = vsub.f32 %v1638_v45, %v1652_v59 }
 0x129   : > { %857 = vperm.xlu0 %1231, %v710_v56   ;;  %852 = vperm.xlu1 %1232, %v709_v55  }
 0x12d   : > { %1234 = vset.pattern.permute.xlu0 %v1403_v58  ;;  %1233 = vset.pattern.permute.xlu1 %v1399_v1 }
 0x12e   : > { %622 = vperm.xlu0 %1234, %v1530_v2   ;;  %602 = vperm.xlu1 %1233, %v1538_v7  }
 0x12f   : > { %v1672_v9 = vpop.permute.xlu0 %590 }
 0x132   : > { %634 = vperm.xlu0 %1234, %v1538_v7   ;;  %1235 = vset.pattern.permute.xlu1 %v1403_v58 }
 0x133   : > { %v567_v62 = vpop.permute.xlu1 %566  ;;  %626 = vperm.xlu1 %1235, %v1534_v4  }
 0x134   : > { %v579_v1 = vsub.f32 %v567_v62, %v1659_v37  ;;  %v1676_v10 = vpop.permute.xlu0 %562 }
 0x136   : > { %v583_v5 = vand.u32 2147483647, %v579_v1  ;;  %1236 = vset.pattern.permute.xlu0 %v1398_v0 }
 0x137   : > { %630 = vperm.xlu1 %1235, %v1532_v3   ;;  %v1668_v6 = vpop.permute.xlu1 %570 }
 0x138   : > { %v1666_v2 = vadd.f32 %v583_v5, %v555_v63  ;;  %v1680_v11 = vpop.permute.xlu0 %785  ;;  %v580_v45 = vsub.f32 %v1668_v6, %v1659_v37 }
 0x139   : > { %v801_v51 = vmin.f32 %v1680_v11, %v1706_v33  ;;  %v901_v48 = vmax.f32 %v1680_v11, %v1706_v33 }
 0x13c   : > { %v1670_v8 = vpop.permute.xlu1 %594  ;;  %v806_v0 = vpop.permute.xlu0 %805 }
 0x13d   : > { %v904_v49 = vmin.f32 %v806_v0, %v1708_v35  ;;  %v824_v54 = vmax.f32 %v806_v0, %v1708_v35 }
 0x140   : > { %v1674_v7 = vpop.permute.xlu1 %598  ;;  %v1684_v17 = vpop.permute.xlu0 %813 }
 0x141   : > { %v826_v55 = vmax.f32 %v1684_v17, %v1708_v35  ;;  %v906_v57 = vmin.f32 %v1684_v17, %v1708_v35 }
 0x145   : > { %v1678_v4 = vpop.permute.xlu1 %723  ;;  %v1688_v19 = vpop.permute.xlu0 %527 }
 0x146   : > { %v741_v60 = vmin.f32 %v1678_v4, %v1703_v32  ;;  %v885_v63 = vmax.f32 %v1678_v4, %v1703_v32 }
 0x149   : > { %v1682_v16 = vpop.permute.xlu1 %728  ;;  %v1691_v21 = vpop.permute.xlu0 %542 }
 0x14a   : > { %v742_v5 = vmin.f32 %v1682_v16, %v1703_v32  ;;  %v886_v11 = vmax.f32 %v1682_v16, %v1703_v32 }
 0x14d   : > { %v747_v3 = vpop.permute.xlu1 %746  ;;  %v719_v25 = vpop.permute.xlu0 %718 }
 0x14e   : > { %v768_v38 = vmax.f32 %v747_v3, %v1699_v30  ;;  %v740_v13 = vmin.f32 %v719_v25, %v1703_v32  ;;  %v888_v41 = vmin.f32 %v747_v3, %v1699_v30  ;;  %v884_v42 = vmax.f32 %v719_v25, %v1703_v32 }
 0x150   : > { %v772_v52 = vsub.f32 %v740_v13, %v768_v38  ;;  %v892_v61 = vsub.f32 %v884_v42, %v888_v41 }
 0x151   : > { %v1686_v18 = vpop.permute.xlu1 %756  ;;  %v1701_v31 = vpop.permute.xlu0 %733 }
 0x152   : > { %v776_v3 = vmax.f32 %v772_v52, 0.0  ;;  %v770_v17 = vmax.f32 %v1686_v18, %v1699_v30  ;;  %v890_v4 = vmin.f32 %v1686_v18, %v1699_v30  ;;  %v896_v26 = vmax.f32 %v892_v61, 0.0 }
 0x153   : > { %v743_v16 = vmin.f32 %v1701_v31, %v1703_v32 }
 0x155   : > { %v752_v43 = vpop.permute.xlu0 %751 }
 0x156   : > { %v782_v14 = vpop.permute.xlu1 %781  ;;  %v889_v62 = vmin.f32 %v752_v43, %v1699_v30  ;;  %v769_v29 = vmax.f32 %v752_v43, %v1699_v30 }
 0x157   : > { %v900_v40 = vmax.f32 %v782_v14, %v1706_v33  ;;  %v800_v28 = vmin.f32 %v782_v14, %v1706_v33 }
 0x158   : > { %v893_v12 = vsub.f32 %v885_v63, %v889_v62 }
 0x159   : > { %v908_v56 = vsub.f32 %v900_v40, %v904_v49  ;;  %v828_v20 = vsub.f32 %v800_v28, %v824_v54  ;;  %v762_v14 = vpop.permute.xlu0 %761  ;;  %v894_v49 = vsub.f32 %v886_v11, %v890_v4  ;;  %v774_v28 = vsub.f32 %v742_v5, %v770_v17 }
 0x15a   : > { %v1693_v22 = vpop.permute.xlu1 %789  ;;  %v891_v36 = vmin.f32 %v762_v14, %v1699_v30  ;;  %v773_v54 = vsub.f32 %v741_v60, %v769_v29  ;;  %v1791_v29 = vpop.f32.mrf.mxu0 }
 0x15b   : > { %v902_v0 = vmax.f32 %v1693_v22, %v1706_v33  ;;  %v912_v23 = vmax.f32 %v908_v56, 0.0  ;;  %v802_v38 = vmin.f32 %v1693_v22, %v1706_v33  ;;  %v832_v40 = vmax.f32 %v828_v20, 0.0 }
 0x15c   : > { %v771_v22 = vmax.f32 %v762_v14, %v1699_v30  ;;  %v898_v63 = vmax.f32 %v894_v49, 0.0  ;;  %v777_v11 = vmax.f32 %v773_v54, 0.0 }
 0x15d   : > { %v910_v13 = vsub.f32 %v902_v0, %v906_v57  ;;  %v830_v61 = vsub.f32 %v802_v38, %v826_v55  ;;  %v549_v55 = vsub.f32 %v1688_v19, %v1652_v59 }
 0x15e   : > { %v1697_v27 = vpop.permute.xlu1 %793  ;;  %v775_v0 = vsub.f32 %v743_v16, %v771_v22 }
 0x15f   : > { %v903_v18 = vmax.f32 %v1697_v27, %v1706_v33  ;;  %v803_v56 = vmin.f32 %v1697_v27, %v1706_v33  ;;  %v639_v33 = vsub.s32 3, %v1642_v53  ;;  %v834_v17 = vmax.f32 %v830_v61, 0.0 }
 0x160   : > { %v779_v16 = vmax.f32 %v775_v0, 0.0 }
 0x162   : > { %v810_v39 = vpop.permute.xlu1 %809 }
 0x163   : > { %v905_v58 = vmin.f32 %v810_v39, %v1708_v35  ;;  %v825_v15 = vmax.f32 %v810_v39, %v1708_v35  ;;  %v887_v39 = vmax.f32 %v1701_v31, %v1703_v32  ;;  %v914_v31 = vmax.f32 %v910_v13, 0.0 }
 0x165   : > { %v909_v24 = vsub.f32 %v901_v48, %v905_v58  ;;  %v829_v41 = vsub.f32 %v801_v51, %v825_v15  ;;  %v1762_v48 = vmul.f32 %v912_v23, %v896_v26  ;;  %v897_v58 = vmax.f32 %v893_v12, 0.0 }
 0x166   : > { %v818_v1 = vpop.permute.xlu1 %817  ;;  %v895_v57 = vsub.f32 %v887_v39, %v891_v36  ;;  %v1779_v20 = vmul.f32 %v914_v31, %v898_v63  ;;  %v609_v12 = vsub.f32 %v1672_v9, %v1718_v46  ;;  %v553_v36 = vand.u32 2147483647, %v549_v55 }
 0x167   : > { %v907_v25 = vmin.f32 %v818_v1, %v1708_v35  ;;  %v827_v42 = vmax.f32 %v818_v1, %v1708_v35  ;;  %v913_v43 = vmax.f32 %v909_v24, 0.0  ;;  %v833_v51 = vmax.f32 %v829_v41, 0.0 }
 0x168   : > { %v1767_v35 = vmul.f32 %v832_v40, %v776_v3  ;;  %v924_v5 = vadd.f32 1e-07, %v1762_v48  ;;  %v899_v3 = vmax.f32 %v895_v57, 0.0  ;;  %v926_v38 = vadd.f32 1e-07, %v1779_v20 }
 0x169   : > { %v911_v52 = vsub.f32 %v903_v18, %v907_v25  ;;  %v831_v62 = vsub.f32 %v803_v56, %v827_v42  ;;  %v1771_v60 = vmul.f32 %v913_v43, %v897_v58  ;;  %v1782_v23 = vmul.f32 %v833_v51, %v777_v11 }
 0x16a   : > { %v778_v25 = vmax.f32 %v774_v28, 0.0  ;;  %1269 = vrcp.f32 %v924_v5  ;;  %v581_v43 = vand.u32 2147483647, %v577_v44  ;;  %v578_v28 = vsub.f32 %v1676_v10, %v1659_v37 }
 0x16b   : > { %v915_v30 = vmax.f32 %v911_v52, 0.0  ;;  %v835_v15 = vmax.f32 %v831_v62, 0.0  ;;  %v925_v26 = vadd.f32 1e-07, %v1771_v60  ;;  %v1808_v52 = vrot.slane %v1648_v34, %v639_v33 }
 0x16c   : > { %v1796_v18 = vmul.f32 %v834_v17, %v778_v25  ;;  %v613_v44 = vand.u32 2147483647, %v609_v12  ;;  %v585_v56 = vadd.f32 %v581_v43, %v553_v36  ;;  %v610_v34 = vsub.f32 %v1670_v8, %v1718_v46 }
 0x16d   : > { %v1786_v53 = vmul.f32 %v915_v30, %v899_v3  ;;  %v1800_v42 = vmul.f32 %v835_v15, %v779_v16  ;;  %v552_v31 = vsub.f32 %v1691_v21, %v1652_v59  ;;  %v582_v51 = vand.u32 2147483647, %v578_v28 }
 0x16e   : > { %v611_v8 = vsub.f32 %v1674_v7, %v1718_v46  ;;  %v617_v63 = vadd.f32 %v613_v44, %v585_v56  ;;  %v554_v30 = vand.u32 2147483647, %v550_v47  ;;  %v614_v59 = vand.u32 2147483647, %v610_v34 }
 0x16f   : > { %v927_v9 = vadd.f32 1e-07, %v1786_v53  ;;  %v556_v0 = vand.u32 2147483647, %v552_v31  ;;  %v584_v3 = vand.u32 2147483647, %v580_v45 }
 0x170   : > { %v586_v55 = vadd.f32 %v582_v51, %v554_v30  ;;  %v615_v17 = vand.u32 2147483647, %v611_v8  ;;  %v946_v30 = vmul.f32 2.0, %v1791_v29 }
 0x171   : > { %v588_v36 = vadd.f32 %v584_v3, %v556_v0 }
 0x172   : > { %v618_v25 = vadd.f32 %v614_v59, %v586_v55 }
 0x177   : > { %v1270_v7 = vpop.eup %1269 }
 0x19c   : > { %v843_v32 = vpop.permute.xlu0 %842 }
 0x19d   : > { %v864_v1 = vadd.f32 %v1721_v50, %v843_v32 }
 0x19f   : > { %v1774_v27 = vsub.f32 %v864_v1, %v1767_v35 }
 0x1a0   : > { %v848_v14 = vpop.permute.xlu1 %847 }
 0x1a1   : > { %v872_v4 = vadd.f32 1e-07, %v1774_v27  ;;  %v865_v24 = vadd.f32 %v1721_v50, %v848_v14  ;;  %v920_v21 = vsub.f32 %v1762_v48, %v1774_v27 }
 0x1a3   : > { %1271 = vrcp.f32 %v872_v4  ;;  %v1789_v19 = vsub.f32 %v865_v24, %v1782_v23  ;;  %v932_v16 = vmul.f32 %v1270_v7, %v920_v21 }
 0x1a4   : > { %v853_v13 = vpop.permute.xlu1 %852  ;;  %v858_v39 = vpop.permute.xlu0 %857  ;;  %1273 = vrcp.f32 %v925_v26 }
 0x1a5   : > { %v873_v40 = vadd.f32 1e-07, %v1789_v19  ;;  %v866_v41 = vadd.f32 %v1721_v50, %v853_v13  ;;  %v867_v49 = vadd.f32 %v1721_v50, %v858_v39  ;;  %v505_v50 = vpop.f32.mrf.mxu0  ;;  %v921_v4 = vsub.f32 %v1771_v60, %v1789_v19 }
 0x1a6   : > { %v944_v27 = vmul.f32 2.0, %v505_v50 }
 0x1a7   : > { %1275 = vrcp.f32 %v873_v40  ;;  %v1813_v54 = vsub.f32 %v866_v41, %v1796_v18  ;;  %v1816_v22 = vsub.f32 %v867_v49, %v1800_v42  ;;  %v1831_v62 = vpop.f32.mrf.mxu0  ;;  %v619_v41 = vadd.f32 %v615_v17, %v1666_v2 }
 0x1a8   : > { %1277 = vrcp.f32 %v926_v38 }
 0x1a9   : > { %v874_v58 = vadd.f32 1e-07, %v1813_v54  ;;  %v875_v10 = vadd.f32 1e-07, %v1816_v22  ;;  %v603_v57 = vpop.permute.xlu1 %602  ;;  %v623_v61 = vpop.permute.xlu0 %622  ;;  %1279 = vrcp.f32 %v927_v9  ;;  %v922_v28 = vsub.f32 %v1779_v20, %v1813_v54 }
 0x1aa   : > { %v641_v32 = vsub.f32 %v623_v61, %v1808_v52  ;;  %v612_v1 = vsub.f32 %v603_v57, %v1718_v46  ;;  %v508_v46 = vpop.f32.mrf.mxu0  ;;  %v923_v2 = vsub.f32 %v1786_v53, %v1816_v22  ;;  %v947_v22 = vmul.f32 2.0, %v1831_v62 }
 0x1ab   : > { %1281 = vrcp.f32 %v874_v58  ;;  %v945_v39 = vmul.f32 2.0, %v508_v46 }
 0x1ac   : > { %1283 = vrcp.f32 %v875_v10  ;;  %v645_v5 = vand.u32 2147483647, %v641_v32  ;;  %v616_v24 = vand.u32 2147483647, %v612_v1 }
 0x1ad   : > { %v635_v11 = vpop.permute.xlu0 %634 }
 0x1ae   : > { %v649_v33 = vadd.f32 %v645_v5, %v617_v63  ;;  %v644_v37 = vsub.f32 %v635_v11, %v1808_v52  ;;  %v627_v6 = vpop.permute.xlu1 %626 }
 0x1af   : > { %v642_v14 = vsub.f32 %v627_v6, %v1808_v52 }
 0x1b0   : > { %v1272_v15 = vpop.eup %1271  ;;  %v940_v48 = vmul.f32 5.0, %v649_v33  ;;  %v648_v38 = vand.u32 2147483647, %v644_v37 }
 0x1b1   : > { %v880_v26 = vmul.f32 %v1272_v15, %v1767_v35  ;;  %v646_v12 = vand.u32 2147483647, %v642_v14  ;;  %v1274_v40 = vpop.eup %1273  ;;  %v620_v35 = vadd.f32 %v616_v24, %v588_v36 }
 0x1b2   : > { %v631_v13 = vpop.permute.xlu1 %630  ;;  %v933_v9 = vmul.f32 %v1274_v40, %v921_v4  ;;  %v948_v50 = vadd.f32 %v944_v27, %v940_v48 }
 0x1b3   : > { %v650_v49 = vadd.f32 %v646_v12, %v618_v25  ;;  %v936_v43 = vsub.f32 %v880_v26, %v932_v16  ;;  %v643_v60 = vsub.f32 %v631_v13, %v1808_v52  ;;  %v652_v10 = vadd.f32 %v648_v38, %v620_v35 }
 0x1b4   : > { %v1276_v19 = vpop.eup %1275 }
 0x1b5   : > { %v881_v47 = vmul.f32 %v1276_v19, %v1782_v23  ;;  %v941_v44 = vmul.f32 5.0, %v650_v49  ;;  %v952_v56 = vmul.f32 2.0, %v936_v43  ;;  %v647_v34 = vand.u32 2147483647, %v643_v60  ;;  %v1278_v58 = vpop.eup %1277 }
 0x1b6   : > { %v1280_v57 = vpop.eup %1279  ;;  %v934_v51 = vmul.f32 %v1278_v58, %v922_v28  ;;  %v943_v53 = vmul.f32 5.0, %v652_v10 }
 0x1b7   : > { %v956_v61 = vsub.f32 %v948_v50, %v952_v56  ;;  %v651_v52 = vadd.f32 %v647_v34, %v619_v41  ;;  %v937_v31 = vsub.f32 %v881_v47, %v933_v9  ;;  %v949_v54 = vadd.f32 %v945_v39, %v941_v44 }
 0x1b8   : > { %v1282_v32 = vpop.eup %1281  ;;  %v935_v63 = vmul.f32 %v1280_v57, %v923_v2 }
 0x1b9   : > { %v1284_v45 = vpop.eup %1283  ;;  %v882_v20 = vmul.f32 %v1282_v32, %v1796_v18  ;;  %960 = vst [vmem:[%s259_s5] sm:$0xff] %v956_v61  ;;  %v942_v23 = vmul.f32 5.0, %v651_v52  ;;  %v953_v8 = vmul.f32 2.0, %v937_v31 }
 0x1ba   : > { %v883_v1 = vmul.f32 %v1284_v45, %v1800_v42  ;;  %v951_v42 = vadd.f32 %v947_v22, %v943_v53 }
 0x1bb   : > { %v938_v5 = vsub.f32 %v882_v20, %v934_v51  ;;  %v957_v59 = vsub.f32 %v949_v54, %v953_v8  ;;  %v950_v11 = vadd.f32 %v946_v30, %v942_v23 }
 0x1bc   : > { %v939_v21 = vsub.f32 %v883_v1, %v935_v63 }
 0x1bd   : > { %v954_v18 = vmul.f32 2.0, %v938_v5  ;;  %961 = vst [vmem:[%s259_s5 + $0x8] sm:$0xff] %v957_v59 }
 0x1be   : > { %v955_v0 = vmul.f32 2.0, %v939_v21 }
 0x1bf   : > { %v958_v62 = vsub.f32 %v950_v11, %v954_v18 }
 0x1c0   : > { %v959_v29 = vsub.f32 %v951_v42, %v955_v0 }
 0x1c1   : > { %962 = vst [vmem:[%s259_s5 + $0x10] sm:$0xff] %v958_v62 }
 0x1c2   : > { %963 = vst [vmem:[%s259_s5 + $0x18] sm:$0xff] %v959_v29 }
 0x1c3   : > { %1326 = shalt.err (!%p1323_p7)
}
 0x1c4   : > { %s1327_s21 = scalar_lea.hbm %s1859_s11, 512  ;;  %s1331_s26 = scalar_lea.hbm %s1910_s4, 1536 }
 0x1c5   : > { %p1328_p10 = scmp.ne.s32.totalorder %s1859_s11, %s1327_s21  ;;  %p1332_p1 = scmp.lt.s32.totalorder %s1859_s11, %s1910_s4 }
 0x1c6   : > { %p1333_p13 = scmp.lt.s32.totalorder %s1331_s26, %s1327_s21 }
 0x1c7   : > { %p1329_p4 = pnand %p1328_p10, %p1483_p9 }
 0x1c8   : > { %p1334_p8 = por %p1333_p13, %p1332_p1 }
 0x1c9   : > { %p1330_p12 = pneg %p1329_p4 }
 0x1cb   : > { %p1335_p0 = pnand %p1334_p8, %p1330_p12 }
 0x1cd   : > { %1338 = shalt.err (!%p1335_p0)
}
 0x1ce   : > { %s1405_s8 = smov 128   ;;  %s1406_s9 = smov 8  }
 0x1cf   : > { %1154 = dma.vmem_to_hbm [thread:$0]  (%p1483_p9), %s1854_s7, 512, %s1859_s11, %s965_s18, %s1405_s8, %s1405_s8, %s1406_s9  }
 0x1d0 PF: > { %p1165_p2 = scmp.ge.s32.totalorder %s1393_s20, 2  ;;  %s995_s10 = sand.u32 1, %s1373_s15  }
 0x1d1   : > { %s996_s12 = scalar_lea.sflag [#allocation4], %s995_s10 }
 0x1d2   : > { %p1161_p3 = pnand %p1165_p2, %p1490_p11 }
 0x1d4   : > { %p1162_p5 = pneg %p1161_p3 }
 0x1d6   : > { %1368 = dma.done.wait (%p1162_p5), %s996_s12, 512  }
 0x1d7   : > { %1370 = vsyncadd (%p1162_p5), %s996_s12, 4294966784  ;;  %s20_s20 = sadd.s32 1, %s1393_s20   ;;  %s1916_s15 = smov %s1377_s16 }
 0x1d8   : > { %p17_p6 = scmp.ge.s32.totalorder %s20_s20, 5   ;;  %s1917_s16 = smov %s1381_s17 }
 0x1d9   : > { %s1918_s17 = smov %s1488_s29  ;;  %s1919_s18 = smov %s1389_s19 }
 0x1da   : > { %s1920_s19 = smov %s1922_s23  ;;  %19 = sbr.rel (!%p17_p6) target bundleno = 6 (0x6), region = 84 }
 0x1df   :  { %1001 = vsyncpa [#allocation3], 1 }
 0x1e0   :  { %1003 = vsyncpa [#allocation3 + $0x1], 1 }
 0x1e1   :  { %1004 = vsyncpa [#allocation4], 1 }
 0x1e2   :  { %1006 = vsyncpa [#allocation4 + $0x1], 1 }

</bundles_post_ra>
